<compile_context>
chip_gen: v5e
topology: v5e:2x2
jax: 0.10.0
libtpu: 0.0.40
codegen_flags: <defaults>
</compile_context>

<pallas_src>
import jax
import jax.numpy as jnp
from jax.experimental import pallas as pl
from jax.experimental.pallas import tpu as pltpu


# ----------------------------------------------------------------------------
# Kernels
# ----------------------------------------------------------------------------
def _gru_tile_math(zb, qb, q, w, uh, b, out_ref):
    """Shared per-tile GRU math. zb/qb bf16 (R,C), q f32 (R,C),
    w bf16 (3R,2R), uh bf16 (R,R), b bf16 (3R,C)."""
    R = q.shape[0]

    # One fused MXU pass for Wu@z+Uu@q, Wr@z+Ur@q, Wh@z  (K = 2R).
    zq = jnp.concatenate([zb, qb], axis=0)                            # (2R, C) bf16
    pre = (jnp.dot(w, zq, preferred_element_type=jnp.float32)
           + b.astype(jnp.float32))                                   # (3R, C) f32

    update = jax.nn.sigmoid(pre[:R])
    reset = jax.nn.sigmoid(pre[R:2 * R])

    h_in = (reset * q).astype(jnp.bfloat16)
    h_cap = jnp.tanh(pre[2 * R:]
                     + jnp.dot(uh, h_in, preferred_element_type=jnp.float32))

    # (1 - u)*q + u*h  ==  q + u*(h - q)   (one fewer VPU op per element)
    out_ref[...] = (q + update * (h_cap - q)).astype(out_ref.dtype)


def _mat_gru_kernel(z_ref, q_ref, w_ref, uh_ref, b_ref, out_ref):
    q = q_ref[...]
    _gru_tile_math(z_ref[...].astype(jnp.bfloat16), q.astype(jnp.bfloat16),
                   q, w_ref[...], uh_ref[...], b_ref[...], out_ref)


def _mat_gru_kernel_shared(q_ref, w_ref, uh_ref, b_ref, out_ref):
    # z_topk is prev_Q: stream prev_Q once, reuse for both halves of zq.
    q = q_ref[...]
    qb = q.astype(jnp.bfloat16)
    _gru_tile_math(qb, qb, q, w_ref[...], uh_ref[...], b_ref[...], out_ref)


# ----------------------------------------------------------------------------
# Wrapper helpers
# ----------------------------------------------------------------------------
def _round_up(x, m):
    return (x + m - 1) // m * m


def _pad_cols(x, target_cols):
    pad = target_cols - x.shape[1]
    return jnp.pad(x, ((0, 0), (0, pad))) if pad > 0 else x


def _pick_col_tile(padded_cols, max_tile=4096):
    """Largest 128-multiple divisor of padded_cols that (a) is <= max_tile and
    (b) leaves >= 2 column blocks (v7x megacore). Falls back to a single block
    when padded_cols has no such split (e.g. padded_cols == 128)."""
    n128 = padded_cols // 128
    tiles = [128 * d for d in range(1, n128 + 1) if n128 % d == 0]
    multi = [t for t in tiles if t <= max_tile and padded_cols // t >= 2]
    return max(multi) if multi else padded_cols


def pack_mat_gru_params(params):
    """Hoistable one-time packing: stacked bf16 gate weights + bf16 bias.
    Call once and reuse across timesteps."""
    rows = params["Wu"].shape[0]
    cols = params["bu"].shape[1]
    padded_cols = _round_up(cols, 128)
    zero = jnp.zeros_like(params["Wh"])
    w = jnp.concatenate([
        jnp.concatenate([params["Wu"], params["Uu"]], axis=1),
        jnp.concatenate([params["Wr"], params["Ur"]], axis=1),
        jnp.concatenate([params["Wh"], zero], axis=1),
    ], axis=0).astype(jnp.bfloat16)                                   # (3R, 2R)
    uh = params["Uh"].astype(jnp.bfloat16)                            # (R, R)
    b = jnp.concatenate([params["bu"], params["br"], params["bh"]],
                        axis=0).astype(jnp.bfloat16)                  # (3R, cols)
    b = _pad_cols(b, padded_cols)                                     # lane-dense
    return {"W": w, "Uh": uh, "b": b, "rows": rows, "cols": cols}


def mat_gru_cell(prev_Q, params, z_topk=None, *, col_tile=None):
    """params: raw dict (Wu,Uu,bu,Wr,Ur,br,Wh,Uh,bh) or pack_mat_gru_params output."""
    packed = params if "W" in params else pack_mat_gru_params(params)
    rows, cols = prev_Q.shape
    assert rows % 8 == 0, "rows must be a multiple of 8 (f32 sublane tile)"
    # rows % 16 == 0 keeps bf16 gate slices packing-aligned (true for rows=32);
    # other values are correct but may relayout.
    assert packed["W"].shape == (3 * rows, 2 * rows)
    assert packed["b"].shape[1] >= cols

    padded_cols = _round_up(cols, 128)
    if col_tile is None:
        col_tile = _pick_col_tile(padded_cols)
    assert col_tile % 128 == 0 and padded_cols % col_tile == 0
    n_col = padded_cols // col_tile

    needs_pad = padded_cols != cols
    # TODO(synk): in a T-step recurrence keep Q padded end-to-end (and fuse
    # steps into one pallas_call) so these pad/slice HBM passes disappear.
    q_in = _pad_cols(prev_Q, padded_cols) if needs_pad else prev_Q
    b_in = packed["b"]

    shared = (z_topk is None) or (z_topk is prev_Q)

    def col_spec(r):
        return pl.BlockSpec((r, col_tile), lambda j: (0, j))

    def resident(shape):
        # Constant index_map -> DMA'd once, stays in VMEM across the grid.
        return pl.BlockSpec(shape, lambda j: (0, 0))

    # Realistic VMEM budget: double-buffered streams + resident weights +
    # headroom for in-kernel intermediates.  Far below v7x's 64 MiB physical
    # VMEM and under v5e's scoped default even at col_tile=4096.
    elt = prev_Q.dtype.itemsize
    per_tile = rows * col_tile * elt * ((1 if shared else 2) + 1)     # q(+z) in, out
    per_tile += 3 * rows * col_tile * 2                               # bf16 bias
    weights = (3 * rows) * (2 * rows) * 2 + rows * rows * 2
    vmem_limit = min(int(4 * per_tile + 2 * weights) + (8 << 20), 32 << 20)

    cparams = pltpu.CompilerParams(
        dimension_semantics=("parallel",),
        vmem_limit_bytes=vmem_limit,
    )
    out_shape = jax.ShapeDtypeStruct((rows, padded_cols), prev_Q.dtype)

    if shared:
        out_padded = pl.pallas_call(
            _mat_gru_kernel_shared,
            out_shape=out_shape,
            grid=(n_col,),
            in_specs=[
                col_spec(rows),                     # prev_Q tile (single stream)
                resident((3 * rows, 2 * rows)),     # [[Wu,Uu],[Wr,Ur],[Wh,0]]
                resident((rows, rows)),             # Uh
                col_spec(3 * rows),                 # bf16 bias tile
            ],
            out_specs=col_spec(rows),
            compiler_params=cparams,
        )(q_in, packed["W"], packed["Uh"], b_in)
    else:
        z_in = _pad_cols(z_topk, padded_cols) if needs_pad else z_topk
        out_padded = pl.pallas_call(
            _mat_gru_kernel,
            out_shape=out_shape,
            grid=(n_col,),
            in_specs=[
                col_spec(rows),                     # z_topk tile
                col_spec(rows),                     # prev_Q tile
                resident((3 * rows, 2 * rows)),     # stacked gate weights
                resident((rows, rows)),             # Uh
                col_spec(3 * rows),                 # bf16 bias tile
            ],
            out_specs=col_spec(rows),
            compiler_params=cparams,
        )(z_in, q_in, packed["W"], packed["Uh"], b_in)

    return out_padded[:, :cols] if needs_pad else out_padded


# ----------------------------------------------------------------------------
# Param init (matches the PyTorch module) and references
# ----------------------------------------------------------------------------
def _xavier_uniform(key, shape, dtype=jnp.float32):
    fan_in, fan_out = shape[0], shape[1]
    limit = jnp.sqrt(6.0 / (fan_in + fan_out)).astype(dtype)
    return jax.random.uniform(key, shape, dtype, minval=-limit, maxval=limit)


def init_mat_gru_cell_params(key, in_feats, out_feats, dtype=jnp.float32):
    keys = jax.random.split(key, 6)
    return {
        "Wu": _xavier_uniform(keys[0], (in_feats, in_feats), dtype),
        "Uu": _xavier_uniform(keys[1], (in_feats, in_feats), dtype),
        "bu": jnp.zeros((in_feats, out_feats), dtype),
        "Wr": _xavier_uniform(keys[2], (in_feats, in_feats), dtype),
        "Ur": _xavier_uniform(keys[3], (in_feats, in_feats), dtype),
        "br": jnp.zeros((in_feats, out_feats), dtype),
        "Wh": _xavier_uniform(keys[4], (in_feats, in_feats), dtype),
        "Uh": _xavier_uniform(keys[5], (in_feats, in_feats), dtype),
        "bh": jnp.zeros((in_feats, out_feats), dtype),
    }


def _reference_f32(prev_Q, params, z_topk=None):
    # Pure-f32 JAX reference of the PyTorch forward.
    if z_topk is None:
        z_topk = prev_Q
    sig = jax.nn.sigmoid
    update = sig(params["Wu"] @ z_topk + params["Uu"] @ prev_Q + params["bu"])
    reset = sig(params["Wr"] @ z_topk + params["Ur"] @ prev_Q + params["br"])
    h_cap = reset * prev_Q
    h_cap = jnp.tanh(params["Wh"] @ z_topk + params["Uh"] @ h_cap + params["bh"])
    return (1.0 - update) * prev_Q + update * h_cap


def _reference_bf16(prev_Q, params, z_topk=None):
    # Mirrors the kernel's precision policy exactly: stacked bf16 weights,
    # bf16 bias, bf16 MXU operands, f32 accumulation / elementwise math.
    packed = params if "W" in params else pack_mat_gru_params(params)
    R, cols = prev_Q.shape
    z = prev_Q if z_topk is None else z_topk
    zq = jnp.concatenate([z.astype(jnp.bfloat16), prev_Q.astype(jnp.bfloat16)],
                         axis=0)
    pre = (jnp.dot(packed["W"], zq, preferred_element_type=jnp.float32)
           + packed["b"][:, :cols].astype(jnp.float32))
    update = jax.nn.sigmoid(pre[:R])
    reset = jax.nn.sigmoid(pre[R:2 * R])
    h_in = (reset * prev_Q).astype(jnp.bfloat16)
    h_cap = jnp.tanh(pre[2 * R:]
                     + jnp.dot(packed["Uh"], h_in,
                               preferred_element_type=jnp.float32))
    return prev_Q + update * (h_cap - prev_Q)


# ----------------------------------------------------------------------------
# Tests
# ----------------------------------------------------------------------------
if __name__ == "__main__":
    key = jax.random.PRNGKey(0)
    ks = jax.random.split(key, 10)
    rows = 32

    # --- test 1: cols=64 (single padded 128-col tile), explicit z + shared z
    cols = 64
    params = init_mat_gru_cell_params(ks[0], rows, cols)
    # Module inits biases to zero; randomize them here to exercise the bf16
    # bias stream in the kernel.
    params["bu"] = 0.1 * jax.random.normal(ks[1], (rows, cols), jnp.float32)
    params["br"] = 0.1 * jax.random.normal(ks[2], (rows, cols), jnp.float32)
    params["bh"] = 0.1 * jax.random.normal(ks[3], (rows, cols), jnp.float32)
    packed = pack_mat_gru_params(params)            # hoisted one-time packing

    prev_Q = jax.random.normal(ks[4], (rows, cols), jnp.float32)
    z_topk = jax.random.normal(ks[5], (rows, cols), jnp.float32)

    new_Q = jax.block_until_ready(mat_gru_cell(prev_Q, packed, z_topk))
    assert new_Q.shape == (rows, cols)
    assert jnp.allclose(new_Q, _reference_bf16(prev_Q, packed, z_topk),
                        atol=2e-3, rtol=2e-3), "mismatch vs bf16 reference"
    assert jnp.allclose(new_Q, _reference_f32(prev_Q, params, z_topk),
                        atol=1e-1, rtol=1e-1), "mismatch vs f32 reference"

    # z_topk=None path (single-stream kernel, z := prev_Q).
    new_Q_default = jax.block_until_ready(mat_gru_cell(prev_Q, packed))
    assert jnp.allclose(new_Q_default, _reference_bf16(prev_Q, packed),
                        atol=2e-3, rtol=2e-3), "mismatch (shared-z path)"
    assert jnp.allclose(new_Q_default, _reference_f32(prev_Q, params),
                        atol=1e-1, rtol=1e-1)

    # --- test 2: non-multiple-of-128 cols -> padded 384, auto tile 128, grid=(3,)
    cols2 = 300
    params2 = init_mat_gru_cell_params(ks[0], rows, cols2)
    params2["bh"] = 0.1 * jax.random.normal(ks[6], (rows, cols2), jnp.float32)
    packed2 = pack_mat_gru_params(params2)
    prev_Q2 = jax.random.normal(ks[7], (rows, cols2), jnp.float32)
    z_topk2 = jax.random.normal(ks[8], (rows, cols2), jnp.float32)

    new_Q2 = jax.block_until_ready(mat_gru_cell(prev_Q2, packed2, z_topk2))
    assert new_Q2.shape == (rows, cols2)
    assert jnp.allclose(new_Q2, _reference_bf16(prev_Q2, packed2, z_topk2),
                        atol=2e-3, rtol=2e-3), "mismatch (ragged cols)"

    # --- test 3: cols=512 -> no padding, auto tile 256, grid=(2,) (megacore-friendly)
    cols3 = 512
    params3 = init_mat_gru_cell_params(ks[0], rows, cols3)
    packed3 = pack_mat_gru_params(params3)
    prev_Q3 = jax.random.normal(ks[9], (rows, cols3), jnp.float32)

    new_Q3 = jax.block_until_ready(mat_gru_cell(prev_Q3, packed3))
    assert new_Q3.shape == (rows, cols3)
    assert jnp.allclose(new_Q3, _reference_bf16(prev_Q3, packed3),
                        atol=2e-3, rtol=2e-3), "mismatch (no-pad, n_col=2)"

    print("KERNEL_OK")
</pallas_src>

<mosaic_0001>
module attributes {stable_mosaic.version = 11 : i64} {
  func.func @_mat_gru_kernel(%arg0: i32, %arg1: memref<32x128xf32, #tpu.memory_space<vmem>>, %arg2: memref<32x128xf32, #tpu.memory_space<vmem>>, %arg3: memref<96x64xbf16, #tpu.memory_space<vmem>>, %arg4: memref<32x32xbf16, #tpu.memory_space<vmem>>, %arg5: memref<96x128xbf16, #tpu.memory_space<vmem>>, %arg6: memref<32x128xf32, #tpu.memory_space<vmem>>) attributes {dimension_semantics = [#tpu.dimension_semantics<parallel>], iteration_bounds = array<i64: 1>, scalar_prefetch = 0 : i64, scratch_operands = 0 : i64, tpu.core_type = #tpu.core_type<tc>, window_params = [{transform_indices = @transform_0, window_bounds = array<i64: 32, 128>}, {transform_indices = @transform_1, window_bounds = array<i64: 32, 128>}, {pipeline_mode = #tpu.pipeline_mode<synchronous>, transform_indices = @transform_2, window_bounds = array<i64: 96, 64>}, {pipeline_mode = #tpu.pipeline_mode<synchronous>, transform_indices = @transform_3, window_bounds = array<i64: 32, 32>}, {transform_indices = @transform_4, window_bounds = array<i64: 96, 128>}, {transform_indices = @transform_5, window_bounds = array<i64: 32, 128>}]} {
    %c0 = arith.constant 0 : index
    %c0_0 = arith.constant 0 : index
    %0 = vector.load %arg2[%c0, %c0_0] : memref<32x128xf32, #tpu.memory_space<vmem>>, vector<32x128xf32>
    %c0_1 = arith.constant 0 : index
    %c0_2 = arith.constant 0 : index
    %1 = vector.load %arg1[%c0_1, %c0_2] : memref<32x128xf32, #tpu.memory_space<vmem>>, vector<32x128xf32>
    %2 = arith.truncf %1 : vector<32x128xf32> to vector<32x128xbf16>
    %3 = arith.truncf %0 : vector<32x128xf32> to vector<32x128xbf16>
    %c0_3 = arith.constant 0 : index
    %c0_4 = arith.constant 0 : index
    %4 = vector.load %arg3[%c0_3, %c0_4] : memref<96x64xbf16, #tpu.memory_space<vmem>>, vector<96x64xbf16>
    %c0_5 = arith.constant 0 : index
    %c0_6 = arith.constant 0 : index
    %5 = vector.load %arg4[%c0_5, %c0_6] : memref<32x32xbf16, #tpu.memory_space<vmem>>, vector<32x32xbf16>
    %c0_7 = arith.constant 0 : index
    %c0_8 = arith.constant 0 : index
    %6 = vector.load %arg5[%c0_7, %c0_8] : memref<96x128xbf16, #tpu.memory_space<vmem>>, vector<96x128xbf16>
    %7 = tpu.concatenate %2, %3 in 0 : vector<32x128xbf16>, vector<32x128xbf16> -> vector<64x128xbf16>
    %cst = arith.constant dense<0.000000e+00> : vector<96x128xf32>
    %8 = tpu.matmul %4, %7, %cst {dimension_numbers = #tpu.dot_dimension_numbers<[1], [0], [0], [1], [0, 0, 1, 1], [], []>} : vector<96x64xbf16>, vector<64x128xbf16>, vector<96x128xf32> -> vector<96x128xf32>
    %9 = arith.extf %6 : vector<96x128xbf16> to vector<96x128xf32>
    %10 = arith.addf %8, %9 : vector<96x128xf32>
    %11 = vector.extract_strided_slice %10 {offsets = [0, 0], sizes = [32, 128], strides = [1, 1]} : vector<96x128xf32> to vector<32x128xf32>
    %12 = arith.negf %11 : vector<32x128xf32>
    %13 = math.exp %12 : vector<32x128xf32>
    %cst_9 = arith.constant 1.000000e+00 : f32
    %14 = vector.broadcast %cst_9 : f32 to vector<32x128xf32>
    %15 = arith.addf %14, %13 : vector<32x128xf32>
    %16 = arith.divf %14, %15 : vector<32x128xf32>
    %17 = vector.extract_strided_slice %10 {offsets = [32, 0], sizes = [32, 128], strides = [1, 1]} : vector<96x128xf32> to vector<32x128xf32>
    %18 = arith.negf %17 : vector<32x128xf32>
    %19 = math.exp %18 : vector<32x128xf32>
    %cst_10 = arith.constant 1.000000e+00 : f32
    %20 = vector.broadcast %cst_10 : f32 to vector<32x128xf32>
    %21 = arith.addf %20, %19 : vector<32x128xf32>
    %22 = arith.divf %20, %21 : vector<32x128xf32>
    %23 = arith.mulf %22, %0 : vector<32x128xf32>
    %24 = arith.truncf %23 : vector<32x128xf32> to vector<32x128xbf16>
    %25 = vector.extract_strided_slice %10 {offsets = [64, 0], sizes = [32, 128], strides = [1, 1]} : vector<96x128xf32> to vector<32x128xf32>
    %cst_11 = arith.constant dense<0.000000e+00> : vector<32x128xf32>
    %26 = tpu.matmul %5, %24, %cst_11 {dimension_numbers = #tpu.dot_dimension_numbers<[1], [0], [0], [1], [0, 0, 1, 1], [], []>} : vector<32x32xbf16>, vector<32x128xbf16>, vector<32x128xf32> -> vector<32x128xf32>
    %27 = arith.addf %25, %26 : vector<32x128xf32>
    %28 = math.tanh %27 : vector<32x128xf32>
    %29 = arith.subf %28, %0 : vector<32x128xf32>
    %30 = arith.mulf %16, %29 : vector<32x128xf32>
    %31 = arith.addf %0, %30 : vector<32x128xf32>
    %c0_12 = arith.constant 0 : index
    %c0_13 = arith.constant 0 : index
    %32 = vector.load %arg6[%c0_12, %c0_13] : memref<32x128xf32, #tpu.memory_space<vmem>>, vector<32x128xf32>
    tpu.vector_store %arg6[%c0_12, %c0_13], %31 {strides = array<i32>} : memref<32x128xf32, #tpu.memory_space<vmem>>, vector<32x128xf32>,
    return
  }
  func.func @transform_0(%arg0: i32) -> (i32, i32) {
    %c0_i32 = arith.constant 0 : i32
    %c0_i32_0 = arith.constant 0 : i32
    return %c0_i32, %arg0 : i32, i32
  }
  func.func @transform_1(%arg0: i32) -> (i32, i32) {
    %c0_i32 = arith.constant 0 : i32
    %c0_i32_0 = arith.constant 0 : i32
    return %c0_i32, %arg0 : i32, i32
  }
  func.func @transform_2(%arg0: i32) -> (i32, i32) {
    %c0_i32 = arith.constant 0 : i32
    %c0_i32_0 = arith.constant 0 : i32
    %c0_i32_1 = arith.constant 0 : i32
    return %c0_i32, %c0_i32_0 : i32, i32
  }
  func.func @transform_3(%arg0: i32) -> (i32, i32) {
    %c0_i32 = arith.constant 0 : i32
    %c0_i32_0 = arith.constant 0 : i32
    %c0_i32_1 = arith.constant 0 : i32
    return %c0_i32, %c0_i32_0 : i32, i32
  }
  func.func @transform_4(%arg0: i32) -> (i32, i32) {
    %c0_i32 = arith.constant 0 : i32
    %c0_i32_0 = arith.constant 0 : i32
    return %c0_i32, %arg0 : i32, i32
  }
  func.func @transform_5(%arg0: i32) -> (i32, i32) {
    %c0_i32 = arith.constant 0 : i32
    %c0_i32_0 = arith.constant 0 : i32
    return %c0_i32, %arg0 : i32, i32
  }
}

</mosaic_0001>

<bundles_post_ra>
// kernel: tpu_custom_call.1
= control target key start
LH: loop header
LB: loop body
LE: loop exit
PB: predicated region body
PF: predicated region fallthrough
CT: control target
= control target key end

     0   :  { %10 = vsyncpa [#allocation3], 0  ;;  %s894_s0 = inlined_call_operand.vmem [shape: f32[32,128], index: 0, kind: input, shape index: {}]   ;;  %s895_s1 = inlined_call_operand.hbm [shape: f32[32,128], index: 1, kind: input, shape index: {}]   ;;  %s896_s2 = inlined_call_operand.vmem [shape: bf16[96,64], index: 2, kind: input, shape index: {}]   ;;  %s897_s3 = inlined_call_operand.hbm [shape: bf16[32,32], index: 3, kind: input, shape index: {}]   ;;  %s898_s4 = inlined_call_operand.vmem [shape: bf16[96,128], index: 4, kind: input, shape index: {}]   ;;  %s899_s5 = inlined_call_operand.hbm [shape: f32[32,128], index: 5, kind: output, shape index: {}]  }
   0x1   :  { %11 = vsyncpa [#allocation6], 0 }
   0x2   :  { %12 = vsyncpa [#allocation4], 0  ;;  %s19_s20 = sshll.u32 %s895_s1, 4  ;;  %s678_s21 = smov [#allocation2]   ;;  %s20_s20 = int_to_ptr.hbm [resolvable:$true] %s19_s20 }
   0x3   :  { %s21_s22 = sshll.u32 %s678_s21, 4  ;;  %s34_s25 = sshll.u32 %s897_s3, 4  ;;  %s22_s22 = int_to_ptr.vmem [resolvable:$true] %s21_s22  ;;  %s35_s25 = int_to_ptr.hbm [resolvable:$true] %s34_s25 }
   0x4   :  { %s679_s26 = smov 128   ;;  %s680_s27 = smov 8  }
   0x5   :  { %27 = dma.hbm_to_vmem [thread:$0]  %s20_s20, 512, %s22_s22, [#allocation3], %s679_s26, %s679_s26, %s680_s27  }
   0x6   :  { %s681_s28 = smov [#allocation5]   ;;  %s682_s30 = smov 64  }
   0x7   :  { %s36_s29 = sshll.u32 %s681_s28, 4  ;;  %s683_s1 = smov 4   ;;  %s37_s29 = int_to_ptr.vmem [resolvable:$true] %s36_s29 }
   0x8   :  { %42 = dma.hbm_to_vmem [thread:$0]  %s35_s25, 256, %s37_s29, [#allocation6], %s682_s30, %s682_s30, %s683_s1  }
   0x9   :  { %672 = dma.done.wait [#allocation3], 512  }
   0xa   :  { %673 = vsyncadd [#allocation3], 4294966784 }
   0xb   :  { %674 = dma.done.wait [#allocation6], 256  }
   0xc   :  { %675 = vsyncadd [#allocation6], 4294967040  ;;  %v724_v0 = vld [vmem:[#allocation2 + $0x10] sm:$0xff]  ;;  %v726_v1 = vld [vmem:[#allocation2 + $0x18] sm:$0xff]  ;;  %vm164_vm0 = vcmask 523264  }
   0xd   :  { %v728_v2 = vld [vmem:[#allocation2] sm:$0xff]  ;;  %v68_v3 = vpack.c.bf16 %v724_v0, %v724_v0  ;;  %v69_v4 = vpack.c.bf16 %v726_v1, %v726_v1  ;;  %v734_v5 = vld [vmem:[#allocation2 + $0x8] sm:$0xff]  ;;  %v60_v7 = vld [vmem:[%s894_s0 + $0x10] sm:$0xff] }
   0xe   :  { %v66_v6 = vpack.c.bf16 %v728_v2, %v728_v2  ;;  %v61_v8 = vld [vmem:[%s894_s0 + $0x18] sm:$0xff]  ;;  %v67_v9 = vpack.c.bf16 %v734_v5, %v734_v5  ;;  %v64_v10 = vpack.c.bf16 %v60_v7, %v60_v7  ;;  %v58_v15 = vld [vmem:[%s894_s0] sm:$0xff]  ;;  %v59_v17 = vld [vmem:[%s894_s0 + $0x8] sm:$0xff]  ;;  %s446_s0 = sshll.u32 %s899_s5, 4  ;;  %s447_s0 = int_to_ptr.hbm [resolvable:$true] %s446_s0 }
   0xf   :  { %v116_v11 = vunpack.c.l.b16 %v68_v3  ;;  %v117_v12 = vunpack.c.l.b16 %v69_v4  ;;  %v65_v14 = vpack.c.bf16 %v61_v8, %v61_v8  ;;  %v62_v19 = vpack.c.bf16 %v58_v15, %v58_v15  ;;  %v510_v28 = vld [vmem:[%s896_s2 + $0x10] sm:$0xff]  ;;  %v511_v29 = vld [vmem:[%s896_s2 + $0x18] sm:$0xff]  ;;  %v508_v30 = vld [vmem:[%s896_s2] sm:$0xff] }
  0x10   :  { %v114_v13 = vunpack.c.l.b16 %v66_v6  ;;  %v115_v16 = vunpack.c.l.b16 %v67_v9  ;;  %v104_v21 = vunpack.c.l.b16 %v64_v10  ;;  %v63_v23 = vpack.c.bf16 %v59_v17, %v59_v17  ;;  %v541_v31 = vld [vmem:[%s898_s4 + $0x10] sm:$0xff]   ;;  %v509_v36 = vld [vmem:[%s896_s2 + $0x8] sm:$0xff]  ;;  %v512_v37 = vld [vmem:[%s896_s2 + $0x20] sm:$0xff] }
  0x11   :  { %v119_v18 = vpack.c.b16 %v117_v12, %v116_v11  ;;  %v105_v22 = vunpack.c.l.b16 %v65_v14  ;;  %v102_v25 = vunpack.c.l.b16 %v62_v19  ;;  %v526_v33 = vunpack.c.l.bf16 %v541_v31  ;;  %v542_v41 = vld [vmem:[%s898_s4 + $0x18] sm:$0xff]   ;;  %v513_v57 = vld [vmem:[%s896_s2 + $0x28] sm:$0xff] }
  0x12   :  { %v118_v20 = vpack.c.b16 %v115_v16, %v114_v13  ;;  %v103_v26 = vunpack.c.l.b16 %v63_v23  ;;  %v527_v34 = vunpack.c.h.bf16 %v541_v31  ;;  %v530_v43 = vunpack.c.l.bf16 %v542_v41 }
  0x13   :  { %545 = vmatpush.bf16.msra.mxu2 %v119_v18  ;;  %187 = vmatpush.bf16.msra.mxu0 %v119_v18  ;;  %v107_v24 = vpack.c.b16 %v105_v22, %v104_v21  ;;  %v531_v49 = vunpack.c.h.bf16 %v542_v41 }
  0x14   :  { %546 = vmatpush.bf16.msra.mxu3 %v119_v18  ;;  %v106_v27 = vpack.c.b16 %v103_v26, %v102_v25 }
  0x17   :  { %547 = vmatpush.bf16.msra.mxu2 %v118_v20  ;;  %188 = vmatpush.bf16.msra.mxu0 %v118_v20 }
  0x18   :  { %548 = vmatpush.bf16.msra.mxu3 %v118_v20 }
  0x1b   :  { %549 = vmatpush.bf16.msra.mxu2 %v107_v24  ;;  %189 = vmatpush.bf16.msra.mxu0 %v107_v24 }
  0x1c   :  { %550 = vmatpush.bf16.msra.mxu3 %v107_v24 }
  0x1f   :  { %551 = vmatpush.bf16.msra.mxu2 %v106_v27  ;;  %190 = vmatpush.bf16.msra.mxu0 %v106_v27 }
  0x20   :  { %552 = vmatpush.bf16.msra.mxu3 %v106_v27 }
  0x22   :  { %486 = vmatmul.msk.bf16.vlgmr.msra.gmra.mxu2 %vm164_vm0, %v510_v28  ;;  %484 = vmatmul.msk.bf16.vlgmr.msra.gmra.mxu0 %vm164_vm0, %v508_v30 }
  0x23   :  { %488 = vmatmul.msk.bf16.vlgmr.msra.gmra.mxu3 %vm164_vm0, %v512_v37 }
  0x32   :  { %487 = vmatmul.msk.bf16.gmra.mxu2 %vm164_vm0, %v511_v29  ;;  %485 = vmatmul.msk.bf16.gmra.mxu0 %vm164_vm0, %v509_v36 }
  0x33   :  { %489 = vmatmul.msk.bf16.gmra.mxu3 %vm164_vm0, %v513_v57 }
  0xa5   :  { %v202_v32 = vpop.f32.mrf.mxu2 }
  0xa6   :  { %v203_v35 = vadd.f32 %v526_v33, %v202_v32 }
  0xa8   :  { %v494_v40 = vmul.f32 -1.442695, %v203_v35 }
  0xad   :  { %v204_v38 = vpop.f32.mrf.mxu2 }
  0xae   :  { %v205_v39 = vadd.f32 %v527_v34, %v204_v38 }
  0xb0   :  { %v495_v42 = vmul.f32 -1.442695, %v205_v39 }
  0xb2   :  { %560 = vpow2.f32 %v495_v42 }
  0xb3   :  { %562 = vpow2.f32 %v494_v40 }
  0xb5   :  { %v207_v44 = vpop.f32.mrf.mxu2 }
  0xb6   :  { %v208_v45 = vadd.f32 %v530_v43, %v207_v44 }
  0xb8   :  { %v561_v46 = vpop.eup %560  ;;  %v496_v47 = vmul.f32 -1.442695, %v208_v45 }
  0xb9   :  { %v563_v48 = vpop.eup %562  ;;  %v778_v50 = vadd.f32 1.0, %v561_v46 }
  0xba   :  { %564 = vpow2.f32 %v496_v47  ;;  %v780_v51 = vadd.f32 1.0, %v563_v48 }
  0xbb   :  { %566 = vrcp.f32 %v778_v50  ;;  %vm334_vm3 = vweird.f32 %v778_v50  ;;  %v338_v22 = vand.u32 2147483647, %v778_v50  ;;  %v340_v23 = vand.u32 2147483648, %v778_v50 }
  0xbc   :  { %568 = vrcp.f32 %v780_v51  ;;  %vm319_vm8 = vweird.f32 %v780_v51  ;;  %v323_v28 = vand.u32 2147483647, %v780_v51  ;;  %v325_v29 = vand.u32 2147483648, %v780_v51 }
  0xbd   :  { %v209_v52 = vpop.f32.mrf.mxu2  ;;  %v341_v36 = vor.u32 1.1754944e-38, %v340_v23  ;;  %vm339_vm15 = vcmp.eq.f32.partialorder %v338_v22, 8.507059e+37 }
  0xbe   :  { %v210_v53 = vadd.f32 %v531_v49, %v209_v52  ;;  %v326_v40 = vor.u32 1.1754944e-38, %v325_v29  ;;  %vm324_vm0 = vcmp.eq.f32.partialorder %v323_v28, 8.507059e+37  ;;  %v514_v49 = vld [vmem:[#allocation5] sm:$0xff] }
  0xbf   :  { %v517_v52 = vld [vmem:[%s898_s4] sm:$0xff]  }
  0xc0   :  { %v565_v54 = vpop.eup %564  ;;  %v497_v55 = vmul.f32 -1.442695, %v210_v53  ;;  %v518_v53 = vunpack.c.l.bf16 %v517_v52  ;;  %v519_v57 = vunpack.c.h.bf16 %v517_v52 }
  0xc1   :  { %v312_v56 = vadd.f32 1.0, %v565_v54  ;;  %v567_v58 = vpop.eup %566 }
  0xc2   :  { %570 = vpow2.f32 %v497_v55  ;;  %v569_v59 = vpop.eup %568  ;;  %v330_v61 = vmul.f32 %v567_v58, %v778_v50  ;;  %vm335_vm4 = vweird.f32 %v567_v58  ;;  %v515_v50 = vld [vmem:[#allocation5 + $0x8] sm:$0xff] }
  0xc3   :  { %572 = vrcp.f32 %v312_v56  ;;  %v315_v3 = vmul.f32 %v569_v59, %v780_v51  ;;  %v355_v15 = vand.u32 2147483648, %v312_v56  ;;  %vm320_vm2 = vweird.f32 %v569_v59  ;;  %vm805_vm9 = vmor %vm334_vm3, %vm335_vm4  ;;  %v192_v51 = vpop.f32.mrf.mxu0 }
  0xc4   :  { %v331_v7 = vsub.f32 1.0, %v330_v61  ;;  %vm349_vm5 = vweird.f32 %v312_v56  ;;  %v353_v16 = vand.u32 2147483647, %v312_v56  ;;  %vm810_vm12 = vmor %vm319_vm8, %vm320_vm2  ;;  %v193_v54 = vadd.f32 %v518_v53, %v192_v51 }
  0xc5   :  { %v316_v8 = vsub.f32 1.0, %v315_v3  ;;  %v356_v27 = vor.u32 1.1754944e-38, %v355_v15  ;;  %v212_v15 = vpop.f32.mrf.mxu3 }
  0xc6   :  { %v332_v10 = vmul.f32 %v567_v58, %v331_v7  ;;  %vm354_vm10 = vcmp.eq.f32.partialorder %v353_v16, 8.507059e+37 }
  0xc7   :  { %v317_v12 = vmul.f32 %v569_v59, %v316_v8 }
  0xc8   :  { %v571_v60 = vpop.eup %570  ;;  %v333_v18 = vadd.f32 %v567_v58, %v332_v10 }
  0xc9   :  { %v573_v62 = vpop.eup %572  ;;  %v313_v63 = vadd.f32 1.0, %v571_v60  ;;  %v318_v21 = vadd.f32 %v569_v59, %v317_v12 }
  0xca   :  { %v345_v4 = vmul.f32 %v573_v62, %v312_v56  ;;  %vm350_vm1 = vweird.f32 %v573_v62  ;;  %v337_v33 = vsel %vm805_vm9, %v567_v58, %v333_v18  ;;  %v490_v56 = vmul.f32 -1.442695, %v193_v54 }
  0xcb   :  { %574 = vrcp.f32 %v313_v63  ;;  %vm791_vm6 = vmor %vm349_vm5, %vm350_vm1  ;;  %v370_v20 = vand.u32 2147483648, %v313_v63  ;;  %v368_v26 = vand.u32 2147483647, %v313_v63  ;;  %vm364_vm11 = vweird.f32 %v313_v63  ;;  %v194_v55 = vpop.f32.mrf.mxu0 }
  0xcc   :  { %v346_v6 = vsub.f32 1.0, %v345_v4  ;;  %v322_v38 = vsel %vm810_vm12, %v569_v59, %v318_v21  ;;  %v342_v41 = vsel %vm339_vm15, %v341_v36, %v337_v33  ;;  %vm390_vm1 = vcmask 261120   ;;  %v540_v59 = vld [vmem:[%s898_s4 + $0x8] sm:$0xff]  }
  0xcd   :  { %v371_v35 = vor.u32 1.1754944e-38, %v370_v20  ;;  %vm369_vm14 = vcmp.eq.f32.partialorder %v368_v26, 8.507059e+37  ;;  %v327_v44 = vsel %vm324_vm0, %v326_v40, %v322_v38  ;;  %v375_v46 = vmul.f32 %v342_v41, %v734_v5  ;;  %v214_v26 = vpop.f32.mrf.mxu3 }
  0xce   :  { %v347_v9 = vmul.f32 %v573_v62, %v346_v6  ;;  %v374_v47 = vmul.f32 %v327_v44, %v728_v2  ;;  %576 = vpow2.f32 %v490_v56  ;;  %v195_v58 = vadd.f32 %v519_v57, %v194_v55 }
  0xcf   :  { %v523_v7 = vunpack.c.h.bf16 %v540_v59 }
  0xd0   :  { %v348_v13 = vadd.f32 %v573_v62, %v347_v9  ;;  %v378_v48 = vpack.c.bf16 %v375_v46, %v374_v47  ;;  %v491_v61 = vmul.f32 -1.442695, %v195_v58 }
  0xd1   :  { %v575_v11 = vpop.eup %574 }
  0xd2   :  { %v360_v14 = vmul.f32 %v575_v11, %v313_v63  ;;  %v352_v24 = vsel %vm791_vm6, %v573_v62, %v348_v13  ;;  %vm365_vm7 = vweird.f32 %v575_v11  ;;  %v522_v62 = vunpack.c.l.bf16 %v540_v59 }
  0xd3   :  { %v357_v34 = vsel %vm354_vm10, %v356_v27, %v352_v24  ;;  %vm366_vm13 = vmor %vm364_vm11, %vm365_vm7  ;;  %v197_v60 = vpop.f32.mrf.mxu0  ;;  %578 = vpow2.f32 %v491_v61 }
  0xd4   :  { %v361_v17 = vsub.f32 1.0, %v360_v14  ;;  %v376_v42 = vmul.f32 %v357_v34, %v724_v0  ;;  %v577_v63 = vpop.eup %576  ;;  %v198_v3 = vadd.f32 %v522_v62, %v197_v60  ;;  %v543_v14 = vld [vmem:[%s898_s4 + $0x20] sm:$0xff]  }
  0xd5   :  { %v234_v4 = vadd.f32 1.0, %v577_v63  ;;  %v534_v18 = vunpack.c.l.bf16 %v543_v14 }
  0xd6   :  { %v362_v25 = vmul.f32 %v575_v11, %v361_v17  ;;  %v492_v6 = vmul.f32 -1.442695, %v198_v3 }
  0xd7   :  { %580 = vrcp.f32 %v234_v4  ;;  %v213_v22 = vadd.f32 %v534_v18, %v212_v15  ;;  %vm243_vm2 = vweird.f32 %v234_v4  ;;  %v249_v29 = vand.u32 2147483648, %v234_v4 }
  0xd8   :  { %v363_v31 = vadd.f32 %v575_v11, %v362_v25  ;;  %582 = vpow2.f32 %v492_v6  ;;  %v247_v34 = vand.u32 2147483647, %v234_v4 }
  0xd9   :  { %v579_v9 = vpop.eup %578 }
  0xda   :  { %v367_v37 = vsel %vm366_vm13, %v575_v11, %v363_v31  ;;  %v828_v11 = vadd.f32 1.0, %v579_v9  ;;  %v535_v31 = vunpack.c.h.bf16 %v543_v14  ;;  %vm248_vm5 = vcmp.eq.f32.partialorder %v247_v34, 8.507059e+37 }
  0xdb   :  { %v372_v39 = vsel %vm369_vm14, %v371_v35, %v367_v37  ;;  %v199_v8 = vpop.f32.mrf.mxu0  ;;  %v544_v37 = vld [vmem:[%s898_s4 + $0x28] sm:$0xff]   ;;  %s684_s4 = smov [#allocation7]  }
  0xdc   :  { %v377_v43 = vmul.f32 %v372_v39, %v726_v1  ;;  %v200_v10 = vadd.f32 %v523_v7, %v199_v8  ;;  %584 = vrcp.f32 %v828_v11  ;;  %v215_v38 = vadd.f32 %v535_v31, %v214_v26  ;;  %s444_s10 = sshll.u32 %s684_s4, 4  ;;  %s445_s10 = int_to_ptr.vmem [resolvable:$true] %s444_s10 }
  0xdd   :  { %v581_v12 = vpop.eup %580  ;;  %v250_v39 = vor.u32 1.1754944e-38, %v249_v29  ;;  %vm258_vm6 = vweird.f32 %v828_v11  ;;  %v262_v54 = vand.u32 2147483647, %v828_v11  ;;  %v539_v8 = vunpack.c.h.bf16 %v544_v37 }
  0xde   :  { %v379_v45 = vpack.c.bf16 %v377_v43, %v376_v42  ;;  %v493_v13 = vmul.f32 -1.442695, %v200_v10  ;;  %v583_v16 = vpop.eup %582  ;;  %v239_v17 = vmul.f32 %v581_v12, %v234_v4  ;;  %vm244_vm3 = vweird.f32 %v581_v12 }
  0xdf   :  { %v834_v19 = vadd.f32 1.0, %v583_v16  ;;  %vm842_vm4 = vmor %vm243_vm2, %vm244_vm3  ;;  %vm263_vm9 = vcmp.eq.f32.partialorder %v262_v54, 8.507059e+37 }
  0xe0   :  { %403 = vmatpush.bf16.msra.mxu1 %v379_v45  ;;  %586 = vpow2.f32 %v493_v13  ;;  %v240_v20 = vsub.f32 1.0, %v239_v17  ;;  %v538_v45 = vunpack.c.l.bf16 %v544_v37 }
  0xe1   :  { %588 = vrcp.f32 %v834_v19  ;;  %vm273_vm10 = vweird.f32 %v834_v19  ;;  %v277_v13 = vand.u32 2147483647, %v834_v19 }
  0xe2   :  { %v585_v21 = vpop.eup %584  ;;  %v241_v24 = vmul.f32 %v581_v12, %v240_v20 }
  0xe3   :  { %v254_v25 = vmul.f32 %v585_v21, %v828_v11  ;;  %vm259_vm7 = vweird.f32 %v585_v21  ;;  %vm278_vm13 = vcmp.eq.f32.partialorder %v277_v13, 8.507059e+37 }
  0xe4   :  { %404 = vmatpush.bf16.msra.mxu1 %v378_v48  ;;  %v242_v33 = vadd.f32 %v581_v12, %v241_v24  ;;  %v217_v48 = vpop.f32.mrf.mxu3  ;;  %vm858_vm8 = vmor %vm258_vm6, %vm259_vm7 }
  0xe5   :  { %v255_v32 = vsub.f32 1.0, %v254_v25  ;;  %v218_v56 = vadd.f32 %v538_v45, %v217_v48 }
  0xe6   :  { %v587_v23 = vpop.eup %586  ;;  %v246_v42 = vsel %vm842_vm4, %v581_v12, %v242_v33 }
  0xe7   :  { %506 = vmatmul.msk.bf16.vlgmr.msra.gmra.mxu1 %vm390_vm1, %v514_v49  ;;  %v838_v30 = vadd.f32 1.0, %v587_v23  ;;  %v840_v35 = vpop.eup %588  ;;  %v256_v40 = vmul.f32 %v585_v21, %v255_v32  ;;  %v264_v49 = vand.u32 2147483648, %v828_v11 }
  0xe8   :  { %v269_v41 = vmul.f32 %v840_v35, %v834_v19  ;;  %vm274_vm11 = vweird.f32 %v840_v35 }
  0xe9   :  { %v257_v53 = vadd.f32 %v585_v21, %v256_v40  ;;  %v265_v59 = vor.u32 1.1754944e-38, %v264_v49  ;;  %vm873_vm12 = vmor %vm273_vm10, %vm274_vm11  ;;  %vm288_vm14 = vweird.f32 %v838_v30  ;;  %v294_v24 = vand.u32 2147483648, %v838_v30 }
  0xea   :  { %v270_v51 = vsub.f32 1.0, %v269_v41 }
  0xeb   :  { %v261_v62 = vsel %vm858_vm8, %v585_v21, %v257_v53  ;;  %v295_v29 = vor.u32 1.1754944e-38, %v294_v24 }
  0xec   :  { %v271_v60 = vmul.f32 %v840_v35, %v270_v51  ;;  %v266_v7 = vsel %vm263_vm9, %v265_v59, %v261_v62  ;;  %v219_v11 = vpop.f32.mrf.mxu3 }
  0xed   :  { %v220_v16 = vadd.f32 %v539_v8, %v219_v11 }
  0xee   :  { %v272_v12 = vadd.f32 %v840_v35, %v271_v60 }
  0xf0   :  { %v276_v20 = vsel %vm873_vm12, %v840_v35, %v272_v12 }
  0xf7   :  { %507 = vmatmul.msk.bf16.gmra.mxu1 %vm390_vm1, %v515_v50  ;;  %v251_v50 = vsel %vm248_vm5, %v250_v39, %v246_v42 }
 0x164   :  { %v406_v27 = vpop.f32.mrf.mxu1 }
 0x165   :  { %v416_v28 = vadd.f32 %v406_v27, %v213_v22  ;;  %v292_v27 = vand.u32 2147483647, %v838_v30 }
 0x167   :  { %590 = vtanh.f32 %v416_v28  ;;  %vm293_vm1 = vcmp.eq.f32.partialorder %v292_v27, 8.507059e+37 }
 0x168   :  { %592 = vrcp.f32 %v838_v30 }
 0x16c   :  { %v408_v43 = vpop.f32.mrf.mxu1 }
 0x16d   :  { %v591_v44 = vpop.eup %590  ;;  %v417_v46 = vadd.f32 %v408_v43, %v215_v38 }
 0x16e   :  { %v424_v47 = vsub.f32 %v591_v44, %v728_v2  ;;  %v593_v55 = vpop.eup %592 }
 0x16f   :  { %594 = vtanh.f32 %v417_v46  ;;  %v284_v61 = vmul.f32 %v593_v55, %v838_v30  ;;  %vm289_vm15 = vweird.f32 %v593_v55 }
 0x170   :  { %v428_v52 = vmul.f32 %v424_v47, %v251_v50  ;;  %vm290_vm0 = vmor %vm288_vm14, %vm289_vm15 }
 0x171   :  { %v285_v9 = vsub.f32 1.0, %v284_v61 }
 0x172   :  { %v432_v58 = vadd.f32 %v428_v52, %v728_v2  ;;  %v279_v2 = vand.u32 2147483648, %v834_v19 }
 0x173   :  { %v286_v18 = vmul.f32 %v593_v55, %v285_v9 }
 0x174   :  { %436 = vst [vmem:[#allocation7] sm:$0xff] %v432_v58  ;;  %v411_v63 = vpop.f32.mrf.mxu1  ;;  %v280_v17 = vor.u32 1.1754944e-38, %v279_v2 }
 0x175   :  { %v595_v3 = vpop.eup %594  ;;  %v418_v4 = vadd.f32 %v411_v63, %v218_v56  ;;  %v287_v26 = vadd.f32 %v593_v55, %v286_v18 }
 0x176   :  { %v425_v6 = vsub.f32 %v595_v3, %v734_v5 }
 0x177   :  { %596 = vtanh.f32 %v418_v4  ;;  %v291_v31 = vsel %vm290_vm0, %v593_v55, %v287_v26 }
 0x178   :  { %v429_v10 = vmul.f32 %v425_v6, %v266_v7  ;;  %v296_v34 = vsel %vm293_vm1, %v295_v29, %v291_v31 }
 0x17a   :  { %v433_v15 = vadd.f32 %v429_v10, %v734_v5  ;;  %v281_v5 = vsel %vm278_vm13, %v280_v17, %v276_v20 }
 0x17c   :  { %437 = vst [vmem:[#allocation7 + $0x8] sm:$0xff] %v433_v15  ;;  %v413_v21 = vpop.f32.mrf.mxu1 }
 0x17d   :  { %v597_v22 = vpop.eup %596  ;;  %v419_v23 = vadd.f32 %v413_v21, %v220_v16 }
 0x17e   :  { %v426_v19 = vsub.f32 %v597_v22, %v724_v0 }
 0x17f   :  { %598 = vtanh.f32 %v419_v23 }
 0x180   :  { %v430_v25 = vmul.f32 %v426_v19, %v281_v5 }
 0x182   :  { %v434_v28 = vadd.f32 %v430_v25, %v724_v0 }
 0x184   :  { %438 = vst [vmem:[#allocation7 + $0x10] sm:$0xff] %v434_v28 }
 0x185   :  { %v599_v32 = vpop.eup %598 }
 0x186   :  { %v427_v33 = vsub.f32 %v599_v32, %v726_v1 }
 0x188   :  { %v431_v35 = vmul.f32 %v427_v33, %v296_v34 }
 0x18a   :  { %v435_v30 = vadd.f32 %v431_v35, %v726_v1 }
 0x18c   :  { %439 = vst [vmem:[#allocation7 + $0x18] sm:$0xff] %v435_v30 }
 0x18d   :  { %452 = dma.vmem_to_hbm [thread:$0]  %s445_s10, 512, %s447_s0, [#allocation4], %s679_s26, %s679_s26, %s680_s27  }
 0x18e   :  { %676 = dma.done.wait [#allocation4], 512  }
 0x18f   :  { %677 = vsyncadd [#allocation4], 4294966784 }
 0x190   :  { %457 = vsyncpa [#allocation3], 1 }
 0x191   :  { %458 = vsyncpa [#allocation6], 1 }
 0x192   :  { %459 = vsyncpa [#allocation4], 1 }

</bundles_post_ra>
